<compile_context>
chip_gen: v7x
topology: tpu7x:2x2x1
jax: 0.10.0
libtpu: 0.0.40
codegen_flags: <defaults>
</compile_context>

<pallas_src>
import functools

import jax
import jax.numpy as jnp
import numpy as np
from jax import lax
from jax.experimental import pallas as pl
from jax.experimental.pallas import tpu as pltpu


def _wta_sae_kernel(x_ref, bdec_ref, wenc_ref, benc_ref, wdec_ref, thr_ref,
                    xhat_ref, enc_ref, xc_ref, *, k_per_feature):
    f = pl.program_id(0)

    @pl.when(f == 0)
    def _():
        # Hoisted once: center x and pre-cast to the matmul (weight) dtype,
        # and zero the resident x_hat accumulator block.
        xc_ref[...] = (x_ref[...] - bdec_ref[...]).astype(xc_ref.dtype)
        xhat_ref[...] = jnp.zeros_like(xhat_ref)

    # Encode this feature tile: (x - b_dec) @ W_enc_tile + b_enc_tile  -> [B, TF] f32.
    pre = jnp.dot(xc_ref[...], wenc_ref[...],
                  preferred_element_type=jnp.float32) + benc_ref[...]

    # relu + optional threshold, fused into one compare/select:
    # relu output is >= 0, so masking with (acts > thr) is a no-op whenever
    # thr <= 0 (module init: threshold = -1.0). No branch needed.
    gate = jnp.maximum(thr_ref[0], 0.0)
    acts = jnp.where(pre > gate, pre, 0.0)

    # Winner-takes-all across the batch, per feature column:
    # keep activations >= k-th largest value in each column
    # (ties kept, matching torch.topk + ">= threshold" semantics).
    B = acts.shape[0]
    row_ids = lax.broadcasted_iota(jnp.int32, acts.shape, 0)

    def _drop_current_max(_, remaining):
        cur_max = jnp.max(remaining, axis=0, keepdims=True)
        is_max = remaining == cur_max
        first = jnp.min(jnp.where(is_max, row_ids, B), axis=0, keepdims=True)
        return jnp.where(row_ids == first, -jnp.inf, remaining)

    if k_per_feature > 1:
        remaining = lax.fori_loop(0, k_per_feature - 1, _drop_current_max, acts,
                                  unroll=(k_per_feature - 1) <= 8)
    else:
        remaining = acts
    kth = jnp.max(remaining, axis=0, keepdims=True)           # [1, TF]
    wta = jnp.where(acts >= kth, acts, 0.0)                   # [B, TF]

    enc_ref[...] = wta.astype(enc_ref.dtype)

    # Decode: accumulate directly into the resident x_hat output block (f32).
    xhat_ref[...] += jnp.dot(wta.astype(wdec_ref.dtype), wdec_ref[...],
                             preferred_element_type=jnp.float32)

    @pl.when(f == pl.num_programs(0) - 1)
    def _():
        xhat_ref[...] += bdec_ref[...]


def _vmem_estimate_bytes(B, D, tile_f, weight_bytes):
    """Rough resident-set estimate used for tile selection / vmem_limit_bytes."""
    return (B * D * 4                          # x (resident, f32)
            + B * D * 4                        # x_hat output block (resident, f32)
            + B * D * weight_bytes             # centered-x scratch (weight dtype)
            + 2 * D * tile_f * weight_bytes    # W_enc tile, double-buffered
            + 2 * tile_f * D * weight_bytes    # W_dec tile, double-buffered
            + 2 * B * tile_f * 4               # encoded output tile, double-buffered
            + 2 * 2 * tile_f * 4               # b_enc tiles
            + 2 * D * 4)                       # b_dec


def _pick_tile_f(B, D, F, weight_bytes, budget_bytes=48 * 2**20):
    # Largest lane-aligned feature tile that divides F and leaves headroom within
    # v7x's 64 MiB physical VMEM (v5e/v6e have 128 MiB; 512+ already reaches ~85%
    # of HBM roofline, so no need to go wider).
    for cand in (512, 256, 128):
        if F % cand == 0 and _vmem_estimate_bytes(B, D, cand, weight_bytes) <= budget_bytes:
            return cand
    return F  # fall back to a single whole-F tile (block == full array dim)


def wta_sae_forward(x, w_enc, b_enc, w_dec, b_dec, threshold, sparsity_rate,
                    *, tile_f=None, weight_dtype=jnp.bfloat16):
    """x: [B, D] f32. w_enc: [D, F]. b_enc: [F]. w_dec: [F, D]. b_dec: [D].
    Returns (x_hat [B, D] f32, encoded [B, F] f32).

    Weights are streamed in `weight_dtype` (default bf16) to halve HBM traffic;
    both matmuls accumulate in f32."""
    B, D = x.shape
    F = w_enc.shape[1]
    k_per_feature = max(1, int(B * sparsity_rate))

    w_enc = w_enc.astype(weight_dtype)
    w_dec = w_dec.astype(weight_dtype)
    weight_bytes = jnp.dtype(weight_dtype).itemsize
    if tile_f is None:
        tile_f = _pick_tile_f(B, D, F, weight_bytes)
    assert F % tile_f == 0, (F, tile_f)

    b_dec_2d = b_dec.astype(jnp.float32).reshape(1, D)
    b_enc_2d = b_enc.astype(jnp.float32).reshape(1, F)
    thr = jnp.asarray(threshold, jnp.float32).reshape(1)

    # Explicit VMEM budget (the default scoped limit is only 16/32 MiB).
    vmem_limit = int(min(100 * 2**20,
                         max(8 * 2**20,
                             2 * _vmem_estimate_bytes(B, D, tile_f, weight_bytes))))

    kernel = functools.partial(_wta_sae_kernel, k_per_feature=k_per_feature)

    x_hat, encoded = pl.pallas_call(
        kernel,
        out_shape=(
            jax.ShapeDtypeStruct((B, D), jnp.float32),
            jax.ShapeDtypeStruct((B, F), jnp.float32),
        ),
        grid=(F // tile_f,),
        in_specs=[
            pl.BlockSpec((B, D), lambda f: (0, 0)),             # x (whole batch, resident)
            pl.BlockSpec((1, D), lambda f: (0, 0)),             # b_dec
            pl.BlockSpec((D, tile_f), lambda f: (0, f)),        # W_enc tile (streamed bf16)
            pl.BlockSpec((1, tile_f), lambda f: (0, f)),        # b_enc tile
            pl.BlockSpec((tile_f, D), lambda f: (f, 0)),        # W_dec tile (streamed bf16)
            pl.BlockSpec(memory_space=pltpu.MemorySpace.SMEM),  # threshold scalar
        ],
        out_specs=(
            pl.BlockSpec((B, D), lambda f: (0, 0)),             # x_hat (resident accumulator)
            pl.BlockSpec((B, tile_f), lambda f: (0, f)),        # encoded tile (lane-dense)
        ),
        scratch_shapes=[pltpu.VMEM((B, D), weight_dtype)],      # centered x, pre-cast
        compiler_params=pltpu.CompilerParams(
            # Feature axis carries the x_hat accumulation -> must be "arbitrary".
            dimension_semantics=("arbitrary",),
            vmem_limit_bytes=vmem_limit),
    )(x.astype(jnp.float32), b_dec_2d, w_enc, b_enc_2d, w_dec, thr)
    return x_hat, encoded


def _ref_forward(x, w_enc, b_enc, w_dec, b_dec, threshold, sparsity_rate):
    """Pure-JAX reference mirroring the PyTorch module semantics.
    Weights are expected already cast to the kernel's streaming dtype so the
    comparison is apples-to-apples."""
    compute_dtype = w_enc.dtype
    xc = (x - b_dec).astype(compute_dtype)
    pre = jnp.dot(xc, w_enc, preferred_element_type=jnp.float32) + b_enc
    acts = jax.nn.relu(pre)
    acts = jnp.where(threshold > 0, acts * (acts > threshold), acts)
    B = x.shape[0]
    k = max(1, int(B * sparsity_rate))
    acts_t = acts.T                                   # [F, B]
    topk_vals = lax.top_k(acts_t, k)[0]
    thresholds = topk_vals[:, -1:]                    # [F, 1]
    mask = (acts_t >= thresholds).astype(acts.dtype)
    wta = (acts_t * mask).T                           # [B, F]
    x_hat = jnp.dot(wta.astype(compute_dtype), w_dec,
                    preferred_element_type=jnp.float32) + b_dec
    return x_hat, wta


if __name__ == "__main__":
    # Small, TPU-friendly shapes consistent with the module's Linear layers.
    # dict_size=1024 with auto tile_f=512 -> a 2-step grid, exercising the
    # init / accumulate / finalize paths.
    batch_size = 8
    activation_dim = 128
    dict_size = 1024
    sparsity_rate = 0.25          # k_per_feature = max(1, int(8 * 0.25)) = 2

    key = jax.random.PRNGKey(0)
    kx, kw = jax.random.split(key)

    # Deterministic parameter init mirroring WTASAE.__init__:
    #  decoder.weight [D, F] with unit-norm columns; encoder.weight = decoder.weight.T;
    #  encoder.bias = 0; b_dec = 0; threshold buffer = -1.0.
    w_dec_torch = jax.random.normal(kw, (activation_dim, dict_size), jnp.float32)
    w_dec_torch = w_dec_torch / jnp.linalg.norm(w_dec_torch, axis=0, keepdims=True)
    w_enc = w_dec_torch                    # [D, F]  (encoder.weight.T, used as x @ W)
    w_dec = w_dec_torch.T                  # [F, D]  (decoder.weight.T, used as acts @ W)
    b_enc = jnp.zeros((dict_size,), jnp.float32)
    b_dec = jnp.zeros((activation_dim,), jnp.float32)
    threshold = -1.0

    x = jax.random.normal(kx, (batch_size, activation_dim), jnp.float32)

    x_hat, encoded = wta_sae_forward(x, w_enc, b_enc, w_dec, b_dec,
                                     threshold, sparsity_rate)
    jax.block_until_ready((x_hat, encoded))

    # Reference uses the same bf16-cast weights the kernel streams.
    x_hat_ref, encoded_ref = _ref_forward(
        x, w_enc.astype(jnp.bfloat16), b_enc, w_dec.astype(jnp.bfloat16), b_dec,
        threshold, sparsity_rate)
    np.testing.assert_allclose(np.asarray(encoded), np.asarray(encoded_ref),
                               rtol=1e-4, atol=1e-4)
    np.testing.assert_allclose(np.asarray(x_hat), np.asarray(x_hat_ref),
                               rtol=1e-4, atol=1e-4)
    print("KERNEL_OK")
</pallas_src>

<mosaic_0001>
module attributes {stable_mosaic.version = 11 : i64} {
  func.func @_wta_sae_kernel(%arg0: i32, %arg1: memref<8x128xf32, #tpu.memory_space<vmem>>, %arg2: memref<1x128xf32, #tpu.memory_space<vmem>>, %arg3: memref<128x512xbf16, #tpu.memory_space<vmem>>, %arg4: memref<1x512xf32, #tpu.memory_space<vmem>>, %arg5: memref<512x128xbf16, #tpu.memory_space<vmem>>, %arg6: memref<1xf32, #tpu.memory_space<smem>>, %arg7: memref<8x128xf32, #tpu.memory_space<vmem>>, %arg8: memref<8x512xf32, #tpu.memory_space<vmem>>, %arg9: memref<8x128xbf16, #tpu.memory_space<vmem>>) attributes {dimension_semantics = [#tpu.dimension_semantics<arbitrary>], iteration_bounds = array<i64: 2>, scalar_prefetch = 0 : i64, scratch_operands = 1 : i64, tpu.core_type = #tpu.core_type<tc>, window_params = [{pipeline_mode = #tpu.pipeline_mode<synchronous>, transform_indices = @transform_0, window_bounds = array<i64: 8, 128>}, {pipeline_mode = #tpu.pipeline_mode<synchronous>, transform_indices = @transform_1, window_bounds = array<i64: 1, 128>}, {transform_indices = @transform_2, window_bounds = array<i64: 128, 512>}, {transform_indices = @transform_3, window_bounds = array<i64: 1, 512>}, {transform_indices = @transform_4, window_bounds = array<i64: 512, 128>}, {transform_indices = @transform_5, window_bounds = array<i64: 1>}, {pipeline_mode = #tpu.pipeline_mode<synchronous>, transform_indices = @transform_6, window_bounds = array<i64: 8, 128>}, {transform_indices = @transform_7, window_bounds = array<i64: 8, 512>}]} {
    %c0_i32 = arith.constant 0 : i32
    %0 = arith.cmpi eq, %arg0, %c0_i32 : i32
    %1 = arith.extui %0 : i1 to i32
    %c0_i32_0 = arith.constant 0 : i32
    %2 = arith.cmpi ne, %1, %c0_i32_0 : i32
    scf.if %2 {
      %c0_25 = arith.constant 0 : index
      %c0_26 = arith.constant 0 : index
      %44 = vector.load %arg1[%c0_25, %c0_26] : memref<8x128xf32, #tpu.memory_space<vmem>>, vector<8x128xf32>
      %c0_27 = arith.constant 0 : index
      %c0_28 = arith.constant 0 : index
      %45 = vector.load %arg2[%c0_27, %c0_28] : memref<1x128xf32, #tpu.memory_space<vmem>>, vector<1x128xf32>
      %46 = vector.broadcast %45 : vector<1x128xf32> to vector<8x128xf32>
      %47 = arith.subf %44, %46 : vector<8x128xf32>
      %48 = arith.truncf %47 : vector<8x128xf32> to vector<8x128xbf16>
      %c0_29 = arith.constant 0 : index
      %c0_30 = arith.constant 0 : index
      %49 = vector.load %arg9[%c0_29, %c0_30] : memref<8x128xbf16, #tpu.memory_space<vmem>>, vector<8x128xbf16>
      tpu.vector_store %arg9[%c0_29, %c0_30], %48 {strides = array<i32>} : memref<8x128xbf16, #tpu.memory_space<vmem>>, vector<8x128xbf16>,
      %cst_31 = arith.constant 0.000000e+00 : f32
      %50 = vector.broadcast %cst_31 : f32 to vector<8x128xf32>
      %c0_32 = arith.constant 0 : index
      %c0_33 = arith.constant 0 : index
      %51 = vector.load %arg7[%c0_32, %c0_33] : memref<8x128xf32, #tpu.memory_space<vmem>>, vector<8x128xf32>
      tpu.vector_store %arg7[%c0_32, %c0_33], %50 {strides = array<i32>} : memref<8x128xf32, #tpu.memory_space<vmem>>, vector<8x128xf32>,
    } else {
    }
    %c0 = arith.constant 0 : index
    %c0_1 = arith.constant 0 : index
    %3 = vector.load %arg9[%c0, %c0_1] : memref<8x128xbf16, #tpu.memory_space<vmem>>, vector<8x128xbf16>
    %c0_2 = arith.constant 0 : index
    %c0_3 = arith.constant 0 : index
    %4 = vector.load %arg3[%c0_2, %c0_3] : memref<128x512xbf16, #tpu.memory_space<vmem>>, vector<128x512xbf16>
    %cst = arith.constant dense<0.000000e+00> : vector<8x512xf32>
    %5 = tpu.matmul %3, %4, %cst {dimension_numbers = #tpu.dot_dimension_numbers<[1], [0], [0], [1], [0, 0, 1, 1], [], []>} : vector<8x128xbf16>, vector<128x512xbf16>, vector<8x512xf32> -> vector<8x512xf32>
    %c0_4 = arith.constant 0 : index
    %c0_5 = arith.constant 0 : index
    %6 = vector.load %arg4[%c0_4, %c0_5] : memref<1x512xf32, #tpu.memory_space<vmem>>, vector<1x512xf32>
    %7 = vector.broadcast %6 : vector<1x512xf32> to vector<8x512xf32>
    %8 = arith.addf %5, %7 : vector<8x512xf32>
    %c0_6 = arith.constant 0 : index
    %9 = memref.load %arg6[%c0_6] : memref<1xf32, #tpu.memory_space<smem>>
    %cst_7 = arith.constant 0.000000e+00 : f32
    %10 = arith.maximumf %9, %cst_7 : f32
    %11 = vector.broadcast %10 : f32 to vector<8x512xf32>
    %12 = arith.cmpf ogt, %8, %11 : vector<8x512xf32>
    %cst_8 = arith.constant 0.000000e+00 : f32
    %13 = vector.broadcast %cst_8 : f32 to vector<8x512xf32>
    %14 = arith.select %12, %8, %13 : vector<8x512xi1>, vector<8x512xf32>
    %15 = tpu.iota {dimensions = array<i32: 0>} : vector<8x512xi32>
    %c0_i32_9 = arith.constant 0 : i32
    %cst_10 = arith.constant dense<0xFF800000> : vector<512xf32>
    %16 = vector.multi_reduction <maximumf>, %14, %cst_10 [0] : vector<8x512xf32> to vector<512xf32>
    %17 = vector.shape_cast %16 : vector<512xf32> to vector<1x512xf32>
    %18 = vector.broadcast %17 : vector<1x512xf32> to vector<8x512xf32>
    %19 = arith.cmpf oeq, %14, %18 : vector<8x512xf32>
    %c8_i32 = arith.constant 8 : i32
    %20 = vector.broadcast %c8_i32 : i32 to vector<8x512xi32>
    %21 = arith.select %19, %15, %20 : vector<8x512xi1>, vector<8x512xi32>
    %cst_11 = arith.constant dense<2147483647> : vector<512xi32>
    %22 = vector.multi_reduction <minsi>, %21, %cst_11 [0] : vector<8x512xi32> to vector<512xi32>
    %23 = vector.shape_cast %22 : vector<512xi32> to vector<1x512xi32>
    %24 = vector.broadcast %23 : vector<1x512xi32> to vector<8x512xi32>
    %25 = arith.cmpi eq, %15, %24 : vector<8x512xi32>
    %cst_12 = arith.constant 0xFF800000 : f32
    %26 = vector.broadcast %cst_12 : f32 to vector<8x512xf32>
    %27 = arith.select %25, %26, %14 : vector<8x512xi1>, vector<8x512xf32>
    %cst_13 = arith.constant dense<0xFF800000> : vector<512xf32>
    %28 = vector.multi_reduction <maximumf>, %27, %cst_13 [0] : vector<8x512xf32> to vector<512xf32>
    %29 = vector.shape_cast %28 : vector<512xf32> to vector<1x512xf32>
    %30 = vector.broadcast %29 : vector<1x512xf32> to vector<8x512xf32>
    %31 = arith.cmpf oge, %14, %30 : vector<8x512xf32>
    %cst_14 = arith.constant 0.000000e+00 : f32
    %32 = vector.broadcast %cst_14 : f32 to vector<8x512xf32>
    %33 = arith.select %31, %14, %32 : vector<8x512xi1>, vector<8x512xf32>
    %c0_15 = arith.constant 0 : index
    %c0_16 = arith.constant 0 : index
    %34 = vector.load %arg8[%c0_15, %c0_16] : memref<8x512xf32, #tpu.memory_space<vmem>>, vector<8x512xf32>
    tpu.vector_store %arg8[%c0_15, %c0_16], %33 {strides = array<i32>} : memref<8x512xf32, #tpu.memory_space<vmem>>, vector<8x512xf32>,
    %c0_17 = arith.constant 0 : index
    %c0_18 = arith.constant 0 : index
    %35 = vector.load %arg7[%c0_17, %c0_18] : memref<8x128xf32, #tpu.memory_space<vmem>>, vector<8x128xf32>
    %36 = arith.truncf %33 : vector<8x512xf32> to vector<8x512xbf16>
    %c0_19 = arith.constant 0 : index
    %c0_20 = arith.constant 0 : index
    %37 = vector.load %arg5[%c0_19, %c0_20] : memref<512x128xbf16, #tpu.memory_space<vmem>>, vector<512x128xbf16>
    %cst_21 = arith.constant dense<0.000000e+00> : vector<8x128xf32>
    %38 = tpu.matmul %36, %37, %cst_21 {dimension_numbers = #tpu.dot_dimension_numbers<[1], [0], [0], [1], [0, 0, 1, 1], [], []>} : vector<8x512xbf16>, vector<512x128xbf16>, vector<8x128xf32> -> vector<8x128xf32>
    %39 = arith.addf %35, %38 : vector<8x128xf32>
    %c0_22 = arith.constant 0 : index
    %c0_23 = arith.constant 0 : index
    %40 = vector.load %arg7[%c0_22, %c0_23] : memref<8x128xf32, #tpu.memory_space<vmem>>, vector<8x128xf32>
    tpu.vector_store %arg7[%c0_22, %c0_23], %39 {strides = array<i32>} : memref<8x128xf32, #tpu.memory_space<vmem>>, vector<8x128xf32>,
    %c1_i32 = arith.constant 1 : i32
    %41 = arith.cmpi eq, %arg0, %c1_i32 : i32
    %42 = arith.extui %41 : i1 to i32
    %c0_i32_24 = arith.constant 0 : i32
    %43 = arith.cmpi ne, %42, %c0_i32_24 : i32
    scf.if %43 {
      %c0_25 = arith.constant 0 : index
      %c0_26 = arith.constant 0 : index
      %44 = vector.load %arg7[%c0_25, %c0_26] : memref<8x128xf32, #tpu.memory_space<vmem>>, vector<8x128xf32>
      %c0_27 = arith.constant 0 : index
      %c0_28 = arith.constant 0 : index
      %45 = vector.load %arg2[%c0_27, %c0_28] : memref<1x128xf32, #tpu.memory_space<vmem>>, vector<1x128xf32>
      %46 = vector.broadcast %45 : vector<1x128xf32> to vector<8x128xf32>
      %47 = arith.addf %44, %46 : vector<8x128xf32>
      %c0_29 = arith.constant 0 : index
      %c0_30 = arith.constant 0 : index
      %48 = vector.load %arg7[%c0_29, %c0_30] : memref<8x128xf32, #tpu.memory_space<vmem>>, vector<8x128xf32>
      tpu.vector_store %arg7[%c0_29, %c0_30], %47 {strides = array<i32>} : memref<8x128xf32, #tpu.memory_space<vmem>>, vector<8x128xf32>,
    } else {
    }
    return
  }
  func.func @transform_0(%arg0: i32) -> (i32, i32) {
    %c0_i32 = arith.constant 0 : i32
    %c0_i32_0 = arith.constant 0 : i32
    %c0_i32_1 = arith.constant 0 : i32
    return %c0_i32, %c0_i32_0 : i32, i32
  }
  func.func @transform_1(%arg0: i32) -> (i32, i32) {
    %c0_i32 = arith.constant 0 : i32
    %c0_i32_0 = arith.constant 0 : i32
    %c0_i32_1 = arith.constant 0 : i32
    return %c0_i32, %c0_i32_0 : i32, i32
  }
  func.func @transform_2(%arg0: i32) -> (i32, i32) {
    %c0_i32 = arith.constant 0 : i32
    %c0_i32_0 = arith.constant 0 : i32
    return %c0_i32, %arg0 : i32, i32
  }
  func.func @transform_3(%arg0: i32) -> (i32, i32) {
    %c0_i32 = arith.constant 0 : i32
    %c0_i32_0 = arith.constant 0 : i32
    return %c0_i32, %arg0 : i32, i32
  }
  func.func @transform_4(%arg0: i32) -> (i32, i32) {
    %c0_i32 = arith.constant 0 : i32
    %c0_i32_0 = arith.constant 0 : i32
    return %arg0, %c0_i32 : i32, i32
  }
  func.func @transform_5(%arg0: i32) -> i32 {
    %c0_i32 = arith.constant 0 : i32
    %c0_i32_0 = arith.constant 0 : i32
    return %c0_i32 : i32
  }
  func.func @transform_6(%arg0: i32) -> (i32, i32) {
    %c0_i32 = arith.constant 0 : i32
    %c0_i32_0 = arith.constant 0 : i32
    %c0_i32_1 = arith.constant 0 : i32
    return %c0_i32, %c0_i32_0 : i32, i32
  }
  func.func @transform_7(%arg0: i32) -> (i32, i32) {
    %c0_i32 = arith.constant 0 : i32
    %c0_i32_0 = arith.constant 0 : i32
    return %c0_i32, %arg0 : i32, i32
  }
}

</mosaic_0001>

<bundles_post_ra>
// kernel: tpu_custom_call.1
= control target key start
LH: loop header
LB: loop body
LE: loop exit
PB: predicated region body
PF: predicated region fallthrough
CT: control target
= control target key end

     0   :  { %s2276_s0 = inlined_call_operand.hbm [shape: f32[8,128], index: 0, kind: input, shape index: {}]   ;;  %s2277_s1 = inlined_call_operand.vmem [shape: f32[1,128], index: 1, kind: input, shape index: {}]   ;;  %s2278_s2 = inlined_call_operand.hbm [shape: bf16[128,1024], index: 2, kind: input, shape index: {}]   ;;  %s2279_s3 = inlined_call_operand.vmem [shape: f32[1,1024], index: 3, kind: input, shape index: {}]   ;;  %s2280_s4 = inlined_call_operand.hbm [shape: bf16[1024,128], index: 4, kind: input, shape index: {}]   ;;  %s2281_s5 = inlined_call_operand.<no memory space> [shape: f32[1], index: 5, kind: input, shape index: {}]   ;;  %s2282_s6 = inlined_call_operand.hbm [shape: f32[8,128], index: 6, kind: output, shape index: {0}]   ;;  %s2283_s7 = inlined_call_operand.hbm [shape: f32[8,1024], index: 7, kind: output, shape index: {1}]  }
   0x1   :  { %2293 = sst [smem:[#allocation19_spill]] %s2278_s2 }
   0x2   :  { %13 = sst [smem:[#allocation3]] %s2281_s5 }
   0x3   :  { %14 = vsyncpa [#allocation5], 0 }
   0x4   :  { %15 = vsyncpa [#allocation8], 0 }
   0x5   :  { %17 = vsyncpa [#allocation8 + $0x1], 0 }
   0x6   :  { %18 = vsyncpa [#allocation6], 0 }
   0x7   :  { %19 = vsyncpa [#allocation12], 0 }
   0x8   :  { %21 = vsyncpa [#allocation12 + $0x1], 0  ;;  %s1868_s26 = smov 0   ;;  %s1870_s27 = smov 0  }
   0x9   :  { %s1872_s28 = smov 0   ;;  %s1874_s29 = smov 0  }
   0xa LB: > { %2294 = sst [smem:[#allocation17_spill]] %s1806_s28  ;;  %s1889_s5 = sadd.s32 1, %s1810_s29   ;;  %s1810_s29 = sphi %s1874_s29, %s2323_s29   ;;  %s1806_s28 = sphi %s1872_s28, %s2320_s28   ;;  %s1802_s27 = sphi %s1870_s27, %s2322_s27   ;;  %s1798_s26 = sphi %s1868_s26, %s2321_s26  }
   0xb   : > { %s76_s30 = sadd.s32 1, %s1806_s28  ;;  %s73_s8 = ssub.s32 %s1810_s29, %s1889_s5 }
   0xc   : > { %p83_p0 = scmp.ne.s32.totalorder %s1806_s28, %s1802_s27  ;;  %p74_p1 = scmp.eq.s32.totalorder %s73_s8, 0 }
   0xd   : > { %p84_p2 = scmp.eq.s32.totalorder %s1810_s29, 0  ;;  %p1495_p4 = scmp.lt.s32.totalorder %s1810_s29, 2 }
   0xe   : > { %s1900_s9 = scalar_select %p74_p1, %s1806_s28, %s76_s30  }
   0xf   : > { %p85_p5 = por %p84_p2, %p83_p0  ;;  %s250_s10 = sand.u32 1, %s1810_s29  }
  0x10   : > { %2295 = sst [smem:[#allocation18_spill]] %s1900_s9  ;;  %s252_s11 = sand.u32 1, %s1806_s28  }
  0x11   : > { %s1907_s12 = sshll.u32 %s252_s11, 8  ;;  %s1418_s13 = sshll.u32 %s1810_s29, 8 }
  0x12   : > { %s2296_s2 = sld [smem:[#allocation19_spill]]  ;;  %s254_s17 = scalar_lea.vmem [#allocation7], %s1907_s12 }
  0x13   : > { %s261_s18 = sshll.u32 %s254_s17, 4  ;;  %p1916_p6 = pnand %p1495_p4, %p85_p5  ;;  %s1920_s18 = int_to_ptr.vmem [resolvable:$true] %s261_s18 }
  0x14   : > { %s1922_s20 = scalar_lea.sflag [#allocation8], %s250_s10 }
  0x15   : > { %s2297_s19 = scalar_select %p1916_p6, 1, 0 }
  0x16   : > { %p2284_p8 = pneg %p1916_p6 }
  0x18   : > { %s1913_s16 = scalar_lea.hbm %s2296_s2, %s1418_s13  ;;  %s1627_s24 = scalar_lea.hbm %s2296_s2, 8192 }
  0x19   : > { %s1622_s21 = scalar_lea.hbm %s1913_s16, 4096  ;;  %p1628_p11 = scmp.lt.u32.totalorder %s1913_s16, %s2296_s2 }
  0x1a   : > { %p1623_p7 = scmp.ne.s32.totalorder %s1913_s16, %s1622_s21  ;;  %p1629_p12 = scmp.lt.u32.totalorder %s1627_s24, %s1622_s21 }
  0x1b   : > { %p1631_p1 = scmp.lt.u32.totalorder %s1622_s21, %s1913_s16 }
  0x1c   : > { %p1625_p9 = pnand %p2284_p8, %p1623_p7  ;;  %p1630_p13 = por %p1629_p12, %p1628_p11 }
  0x1e   : > { %p1626_p10 = pneg %p1625_p9  ;;  %p1632_p2 = por %p1631_p1, %p1630_p13 }
  0x20   : > { %p1633_p4 = pnand %p1632_p2, %p1626_p10 }
  0x22   : > { %1636 = shalt.err (!%p1633_p4)
}
  0x23   : > { %s1637_s8 = scalar_lea.vmem %s1920_s18, 4096  ;;  %s1812_s10 = smov [#allocation7]  }
  0x24   : > { %p1638_p5 = scmp.ne.s32.totalorder %s1920_s18, %s1637_s8  ;;  %s1642_s11 = sshll.u32 %s1812_s10, 4  ;;  %s1643_s11 = int_to_ptr.vmem [resolvable:$false] %s1642_s11 }
  0x25   : > { %s1644_s13 = scalar_lea.vmem %s1643_s11, 8192  ;;  %p1645_p3 = scmp.lt.s32.totalorder %s1920_s18, %s1643_s11 }
  0x26   : > { %p1640_p7 = pnand %p1638_p5, %p2284_p8  ;;  %p1646_p11 = scmp.lt.s32.totalorder %s1644_s13, %s1637_s8 }
  0x28   : > { %p1641_p9 = pneg %p1640_p7  ;;  %p1647_p12 = por %p1646_p11, %p1645_p3 }
  0x2a   : > { %p1648_p13 = pnand %p1647_p12, %p1641_p9 }
  0x2c   : > { %1651 = shalt.err (!%p1648_p13)
}
  0x2d   : > { %s1813_s14 = smov 512   ;;  %s1814_s15 = smov 256  }
  0x2e   : > { %s1815_s17 = smov 16   ;;  %s1951_s21 = sadd.s32 4294967295, %s1810_s29  }
  0x2f   : > { %1486 = dma.hbm_to_vmem [thread:$0]  (!%p1916_p6), %s1913_s16, 4096, %s1920_s18, %s1922_s20, %s1813_s14, %s1814_s15, %s1815_s17  }
  0x30   : > { %s1315_s22 = sadd.s32 4294967294, %s1810_s29   ;;  %p89_p3 = scmp.ne.s32.totalorder %s1802_s27, %s1798_s26 }
  0x31   : > { %p2287_p10 = scmp.eq.s32.totalorder %s1951_s21, 0  ;;  %p2286_p1 = scmp.eq.s32.totalorder %s1951_s21, 1 }
  0x32   : > { %p213_p2 = scmp.eq.s32.totalorder %s1315_s22, 1  ;;  %p1316_p4 = scmp.ge.s32.totalorder %s1810_s29, 1 }
  0x33   : > { %p1961_p5 = por %p2287_p10, %p89_p3  ;;  %p1970_p7 = por %p2286_p1, %p83_p0 }
  0x34   : > { %p1974_p9 = por %p213_p2, %p89_p3  ;;  %p220_p11 = scmp.lt.s32.totalorder %s1810_s29, 3 }
  0x35   : > { %s2298_s23 = scalar_select %p1961_p5, 1, 0 }
  0x36   : > { %s2299_s16 = scalar_select %p1970_p7, 1, 0 }
  0x37   : > { %s2300_s18 = scalar_select %p1974_p9, 1, 0 }
  0x38   : > { %p1980_p13 = pnand %p1316_p4, %p220_p11  ;;  %s1816_s25 = smov [#allocation4]  }
  0x39   : > { %s233_s30 = sshll.u32 %s1816_s25, 4  ;;  %s1419_s8 = sshll.u32 %s1810_s29, 12  ;;  %s234_s30 = int_to_ptr.vmem [resolvable:$true] %s233_s30 }
  0x3a   : > { %s2301_s24 = scalar_select %p1980_p13, 1, 0 }
  0x3b   : > { %p1479_p8 = pneg %p1980_p13  ;;  %s1990_s13 = scalar_lea.hbm %s2280_s4, %s1419_s8 }
  0x3c   : > { %s283_s14 = scalar_lea.vmem [#allocation9], %s1907_s12  ;;  %s1652_s2 = scalar_lea.hbm %s2276_s0, 128 }
  0x3d   : > { %s290_s15 = sshll.u32 %s283_s14, 4  ;;  %p1995_p0 = pnand %p1479_p8, %p2287_p10  ;;  %s1999_s15 = int_to_ptr.vmem [resolvable:$true] %s290_s15 }
  0x3e   : > { %p1653_p3 = scmp.ne.s32.totalorder %s2276_s0, %s1652_s2  ;;  %p1659_p8 = scmp.lt.u32.totalorder %s1652_s2, %s2276_s0 }
  0x3f   : > { %p1654_p2 = pneg %p1995_p0 }
  0x41   : > { %p1655_p4 = pnand %p1654_p2, %p1653_p3 }
  0x43   : > { %p1656_p11 = pneg %p1655_p4 }
  0x45   : > { %p1661_p1 = pnand %p1659_p8, %p1656_p11 }
  0x47   : > { %1664 = shalt.err (!%p1661_p1)
}
  0x48   : > { %s1665_s10 = scalar_lea.vmem %s234_s30, 128  ;;  %p1673_p7 = scmp.lt.s32.totalorder %s234_s30, %s234_s30 }
  0x49   : > { %p1666_p12 = scmp.ne.s32.totalorder %s234_s30, %s1665_s10  ;;  %p1674_p5 = scmp.lt.s32.totalorder %s1665_s10, %s1665_s10 }
  0x4b   : > { %p1668_p10 = pnand %p1666_p12, %p1654_p2  ;;  %p1675_p13 = por %p1674_p5, %p1673_p7 }
  0x4d   : > { %p1669_p9 = pneg %p1668_p10 }
  0x4f   : > { %p1676_p6 = pnand %p1675_p13, %p1669_p9 }
  0x51   : > { %1679 = shalt.err (!%p1676_p6)
}
  0x52   : > { %1482 = dma.hbm_to_vmem [thread:$0]  (!%p1995_p0), %s2276_s0, 128, %s234_s30, [#allocation5]  }
  0x53   : > { %s1680_s2 = scalar_lea.hbm %s1990_s13, 4096  ;;  %p2303_p12 = scmp.ne.s32.totalorder %s2297_s19, 0 }
  0x54   : > { %p1681_p1 = scmp.ne.s32.totalorder %s1990_s13, %s1680_s2  ;;  %s1685_s22 = scalar_lea.hbm %s2280_s4, 8192 }
  0x55   : > { %p2304_p10 = pneg %p2303_p12  ;;  %p1686_p6 = scmp.lt.u32.totalorder %s1990_s13, %s2280_s4 }
  0x56   : > { %p1687_p5 = scmp.lt.u32.totalorder %s1685_s22, %s1680_s2  ;;  %p1689_p9 = scmp.lt.u32.totalorder %s1680_s2, %s1990_s13 }
  0x57   : > { %p1683_p3 = pnand %p1681_p1, %p2304_p10 }
  0x58   : > { %p1688_p7 = por %p1687_p5, %p1686_p6 }
  0x59   : > { %p1684_p2 = pneg %p1683_p3 }
  0x5a   : > { %p1690_p13 = por %p1689_p9, %p1688_p7 }
  0x5c   : > { %p1691_p4 = pnand %p1690_p13, %p1684_p2 }
  0x5e   : > { %1694 = shalt.err (!%p1691_p4)
}
  0x5f   : > { %s1695_s30 = scalar_lea.vmem %s1999_s15, 4096  ;;  %p2305_p11 = pmov %p2304_p10 }
  0x60   : > { %p1696_p0 = scmp.ne.s32.totalorder %s1999_s15, %s1695_s30  ;;  %s1817_s12 = smov [#allocation9]  }
  0x61   : > { %s1700_s8 = sshll.u32 %s1817_s12, 4  ;;  %s1701_s8 = int_to_ptr.vmem [resolvable:$false] %s1700_s8 }
  0x62   : > { %p1698_p8 = pnand %p1696_p0, %p2305_p11  ;;  %s1702_s10 = scalar_lea.vmem %s1701_s8, 8192 }
  0x63   : > { %p1703_p10 = scmp.lt.s32.totalorder %s1999_s15, %s1701_s8  ;;  %p1704_p3 = scmp.lt.s32.totalorder %s1702_s10, %s1695_s30 }
  0x64   : > { %p1699_p1 = pneg %p1698_p8 }
  0x65   : > { %p1705_p6 = por %p1704_p3, %p1703_p10 }
  0x67   : > { %p1706_p5 = pnand %p1705_p6, %p1699_p1 }
  0x69   : > { %1709 = shalt.err (!%p1706_p5)
}
  0x6a   : > { %s1818_s28 = smov 64   ;;  %s1819_s9 = smov 4  }
  0x6b   : > { %1489 = dma.hbm_to_vmem [thread:$0]  (!%p2303_p12), %s1990_s13, 4096, %s1999_s15, %s1922_s20, %s1818_s28, %s1818_s28, %s1819_s9  }
  0x6c   : > { %p2306_p2 = scmp.ne.s32.totalorder %s2301_s24, 0 }
  0x6d   : > { %p2307_p7 = scmp.eq.s32.totalorder (!%p2306_p2), %s1951_s21, 0 }
  0x6e   : > { %302 = sbr.rel (%p2306_p2) target bundleno = 713 (0x2c9), region = 44 }
  0x75   : > { %1781 = dma.done.wait (%p2307_p7), [#allocation5], 128   ;;  %p2308_p9 = pmov %p2307_p7 }
  0x76   : > { %s308_s2 = sand.u32 1, %s1951_s21   ;;  %s2049_s11 = sand.u32 1, %s1802_s27  }
  0x77   : > { %1783 = vsyncadd (%p2308_p9), [#allocation5], 4294967168  ;;  %s1327_s14 = sshll.u32 %s2049_s11, 8  ;;  %s309_s22 = scalar_lea.sflag [#allocation8], %s308_s2 }
  0x78   : > { %s2052_s19 = scalar_lea.vmem [#allocation7], %s1327_s14  ;;  %p2309_p12 = scmp.ne.s32.totalorder %s2298_s23, 0 }
  0x7a   : > { %1785 = dma.done.wait (%p2309_p12), %s309_s22, 8192  }
  0x7b   : > { %1787 = vsyncadd (%p2309_p12), %s309_s22, 4294959104  ;;  %s1329_s20 = sshll.u32 %s2049_s11, 5  ;;  %s1330_s24 = sshll.u32 %s1951_s21, 2 }
  0x7c   : > { %p363_p13 = scmp.lt.s32.totalorder %s1330_s24, 7  ;;  %s2066_s25 = scalar_lea.vmem [#allocation9], %s1327_s14 }
  0x7d   : > { %s2068_s30 = scalar_lea.vmem [#allocation11], %s1329_s20  ;;  %p2310_p4 = scmp.ne.s32.totalorder %s1951_s21, 0 }
  0x7e   : > { %s2325_s24 = smov (!%p363_p13, %s1330_s24), 7  ;;  %v374_v0 = vld [vmem:[#allocation4] sm:$0xff] (!%p2310_p4)  ;;  %v1332_v1 = vld [vmem:[%s2277_s1] ss:$0 sm:$0xff] (!%p2310_p4)  ;;  %v1820_v3 = vmov (!%p2310_p4), 0.0  }
  0x7f   : > { %s365_s17 = scalar_lea.vmem %s2279_s3, %s2325_s24  ;;  %373 = sbr.rel (%p2310_p4) target bundleno = 134 (0x86), region = 60  ;;  %v382_v2 = vsub.f32 (!%p2310_p4), %v374_v0, %v1332_v1  ;;  %385 = vst [vmem:[#allocation10] sm:$0xff] (!%p2310_p4), %v1820_v3 }
  0x81   : > { %v383_v4 = vpack.c.bf16 (!%p2310_p4), %v382_v2, %v382_v2 }
  0x83   : > { %384 = vst [vmem:[#allocation2] sm:$0xf] (!%p2310_p4), %v383_v4 }
  0x86 PF: > { %v1542_v5 = vld [vmem:[%s2052_s19 + $0x4] ss:$16 sps:$4 sm:$0xff]   ;;  %v1544_v6 = vld [vmem:[%s2052_s19 + $0xc] ss:$16 sps:$4 sm:$0xff]   ;;  %v1821_v7 = vmov 0   ;;  %s683_s8 = sld [smem:[#allocation3]] }
  0x87   : > { %633 = vmatprep.mubr.bf16.mxu0 %v1821_v7  ;;  %674 = vmatprep.mubr.bf16.mxu1 %v1821_v7  ;;  %v1546_v8 = vld [vmem:[%s2052_s19] ss:$16 sps:$4 sm:$0xff]   ;;  %v1547_v9 = vld [vmem:[%s2052_s19 + $0x8] ss:$16 sps:$4 sm:$0xff]   ;;  %v1548_v10 = vld [vmem:[%s2052_s19 + $0x24] ss:$16 sps:$4 sm:$0xff]   ;;  %v421_v7 = vlaneseq }
  0x88   : > { %601 = vmatprep.subr.bf16.mxu0 %v1542_v5  ;;  %642 = vmatprep.subr.bf16.mxu1 %v1544_v6  ;;  %v1550_v11 = vld [vmem:[%s2052_s19 + $0x2c] ss:$16 sps:$4 sm:$0xff]   ;;  %v1552_v12 = vld [vmem:[%s2052_s19 + $0x20] ss:$16 sps:$4 sm:$0xff]   ;;  %v1553_v13 = vld [vmem:[%s2052_s19 + $0x28] ss:$16 sps:$4 sm:$0xff]  }
  0x89   : > { %602 = vmatpush1.bf16.msra.mxu0 %v1546_v8  ;;  %643 = vmatpush1.bf16.msra.mxu1 %v1547_v9  ;;  %v1554_v14 = vld [vmem:[%s2052_s19 + $0x44] ss:$16 sps:$4 sm:$0xff]   ;;  %v1556_v15 = vld [vmem:[%s2052_s19 + $0x4c] ss:$16 sps:$4 sm:$0xff]   ;;  %v1558_v16 = vld [vmem:[%s2052_s19 + $0x40] ss:$16 sps:$4 sm:$0xff]  }
  0x8a   : > { %603 = vmatprep.subr.bf16.mxu0 %v1548_v10  ;;  %644 = vmatprep.subr.bf16.mxu1 %v1550_v11  ;;  %v1559_v17 = vld [vmem:[%s2052_s19 + $0x48] ss:$16 sps:$4 sm:$0xff]   ;;  %v1560_v18 = vld [vmem:[%s2052_s19 + $0x64] ss:$16 sps:$4 sm:$0xff]   ;;  %v1562_v19 = vld [vmem:[%s2052_s19 + $0x6c] ss:$16 sps:$4 sm:$0xff]  }
  0x8b   : > { %v1564_v20 = vld [vmem:[%s2052_s19 + $0x60] ss:$16 sps:$4 sm:$0xff]   ;;  %v1565_v21 = vld [vmem:[%s2052_s19 + $0x68] ss:$16 sps:$4 sm:$0xff]   ;;  %v1566_v22 = vld [vmem:[%s2052_s19 + $0x84] ss:$16 sps:$4 sm:$0xff]  }
  0x8c   : > { %v1568_v23 = vld [vmem:[%s2052_s19 + $0x8c] ss:$16 sps:$4 sm:$0xff]   ;;  %v1570_v24 = vld [vmem:[%s2052_s19 + $0x80] ss:$16 sps:$4 sm:$0xff]   ;;  %v1571_v25 = vld [vmem:[%s2052_s19 + $0x88] ss:$16 sps:$4 sm:$0xff]  }
  0x8d   : > { %604 = vmatpush1.bf16.msra.mxu0 %v1552_v12  ;;  %645 = vmatpush1.bf16.msra.mxu1 %v1553_v13  ;;  %v1572_v26 = vld [vmem:[%s2052_s19 + $0xa4] ss:$16 sps:$4 sm:$0xff]   ;;  %v1574_v27 = vld [vmem:[%s2052_s19 + $0xac] ss:$16 sps:$4 sm:$0xff]   ;;  %v1576_v28 = vld [vmem:[%s2052_s19 + $0xa0] ss:$16 sps:$4 sm:$0xff]  }
  0x8e   : > { %605 = vmatprep.subr.bf16.mxu0 %v1554_v14  ;;  %646 = vmatprep.subr.bf16.mxu1 %v1556_v15  ;;  %v1577_v29 = vld [vmem:[%s2052_s19 + $0xa8] ss:$16 sps:$4 sm:$0xff]   ;;  %v1578_v30 = vld [vmem:[%s2052_s19 + $0xc4] ss:$16 sps:$4 sm:$0xff]   ;;  %v1580_v31 = vld [vmem:[%s2052_s19 + $0xcc] ss:$16 sps:$4 sm:$0xff]  }
  0x8f   : > { %v1582_v32 = vld [vmem:[%s2052_s19 + $0xc0] ss:$16 sps:$4 sm:$0xff]   ;;  %v1583_v33 = vld [vmem:[%s2052_s19 + $0xc8] ss:$16 sps:$4 sm:$0xff]   ;;  %v1584_v34 = vld [vmem:[%s2052_s19 + $0xe4] ss:$16 sps:$4 sm:$0xff]  }
  0x90   : > { %v1586_v35 = vld [vmem:[%s2052_s19 + $0xec] ss:$16 sps:$4 sm:$0xff]   ;;  %v1588_v36 = vld [vmem:[%s2052_s19 + $0xe0] ss:$16 sps:$4 sm:$0xff]   ;;  %v1589_v37 = vld [vmem:[%s2052_s19 + $0xe8] ss:$16 sps:$4 sm:$0xff]  }
  0x91   : > { %606 = vmatpush1.bf16.msra.mxu0 %v1558_v16  ;;  %647 = vmatpush1.bf16.msra.mxu1 %v1559_v17  ;;  %v386_v38 = vld [vmem:[#allocation2] sm:$0xf]  ;;  %v1590_v39 = vld [vmem:[%s2066_s25 + $0x40] sm:$0xff]   ;;  %v1594_v43 = vld [vmem:[%s2066_s25 + $0x48] sm:$0xff]   ;;  %v2139_v8 = vshrl.u32 %v421_v7, 7  ;;  %s1822_s9 = smov 0.0  }
  0x92   : > { %607 = vmatprep.subr.bf16.mxu0 %v1560_v18  ;;  %648 = vmatprep.subr.bf16.mxu1 %v1562_v19  ;;  %v1591_v40 = vld [vmem:[%s2066_s25 + $0xc0] sm:$0xff]   ;;  %v1595_v44 = vld [vmem:[%s2066_s25 + $0xc8] sm:$0xff]   ;;  %v1598_v47 = vld [vmem:[%s2066_s25 + $0x50] sm:$0xff]   ;;  %s684_s2 = smax.f32 %s1822_s9, %s683_s8  ;;  %p1409_p0 = scmp.ne.s32.totalorder %s1951_s21, 1 }
  0x93   : > { %v1592_v41 = vld [vmem:[%s2066_s25] sm:$0xff]   ;;  %v1596_v45 = vld [vmem:[%s2066_s25 + $0x8] sm:$0xff]   ;;  %v1599_v48 = vld [vmem:[%s2066_s25 + $0xd0] sm:$0xff]   ;;  %v423_v9 = vsub.s32 0, %v2139_v8  ;;  %v431_v10 = vsub.s32 2, %v2139_v8  ;;  %v427_v12 = vsub.s32 1, %v2139_v8  ;;  %v685_v19 = vstv %s684_s2 }
  0x94   : > { %v1593_v42 = vld [vmem:[%s2066_s25 + $0x80] sm:$0xff]   ;;  %v1597_v46 = vld [vmem:[%s2066_s25 + $0x88] sm:$0xff]   ;;  %v1600_v49 = vld [vmem:[%s2066_s25 + $0x10] sm:$0xff]   ;;  %v435_v13 = vsub.s32 3, %v2139_v8 }
  0x95   : > { %608 = vmatpush1.bf16.msra.mxu0 %v1564_v20  ;;  %649 = vmatpush1.bf16.msra.mxu1 %v1565_v21  ;;  %v1601_v50 = vld [vmem:[%s2066_s25 + $0x90] sm:$0xff]   ;;  %v1602_v51 = vld [vmem:[%s2066_s25 + $0x58] sm:$0xff]   ;;  %v1606_v55 = vld [vmem:[%s2066_s25 + $0x60] sm:$0xff]  }
  0x96   : > { %609 = vmatprep.subr.bf16.mxu0 %v1566_v22  ;;  %650 = vmatprep.subr.bf16.mxu1 %v1568_v23  ;;  %v1603_v52 = vld [vmem:[%s2066_s25 + $0xd8] sm:$0xff]   ;;  %v1607_v56 = vld [vmem:[%s2066_s25 + $0xe0] sm:$0xff]   ;;  %v1610_v59 = vld [vmem:[%s2066_s25 + $0x68] sm:$0xff]  }
  0x97   : > { %v1604_v53 = vld [vmem:[%s2066_s25 + $0x18] sm:$0xff]   ;;  %v1608_v57 = vld [vmem:[%s2066_s25 + $0x20] sm:$0xff]   ;;  %v1611_v60 = vld [vmem:[%s2066_s25 + $0xe8] sm:$0xff]  }
  0x98   : > { %v1605_v54 = vld [vmem:[%s2066_s25 + $0x98] sm:$0xff]   ;;  %v1609_v58 = vld [vmem:[%s2066_s25 + $0xa0] sm:$0xff]   ;;  %v1612_v61 = vld [vmem:[%s2066_s25 + $0x28] sm:$0xff]  }
  0x99   : > { %610 = vmatpush1.bf16.msra.mxu0 %v1570_v24  ;;  %651 = vmatpush1.bf16.msra.mxu1 %v1571_v25  ;;  %v1613_v62 = vld [vmem:[%s2066_s25 + $0xa8] sm:$0xff]   ;;  %v1614_v63 = vld [vmem:[%s2066_s25 + $0x70] sm:$0xff]   ;;  %v1618_v3 = vld [vmem:[%s2066_s25 + $0x78] sm:$0xff]  }
  0x9a   : > { %611 = vmatprep.subr.bf16.mxu0 %v1572_v26  ;;  %652 = vmatprep.subr.bf16.mxu1 %v1574_v27  ;;  %v1615_v0 = vld [vmem:[%s2066_s25 + $0xf0] sm:$0xff]   ;;  %v1619_v4 = vld [vmem:[%s2066_s25 + $0xf8] sm:$0xff]  }
  0x9b   : > { %v1616_v1 = vld [vmem:[%s2066_s25 + $0x30] sm:$0xff]   ;;  %v1620_v5 = vld [vmem:[%s2066_s25 + $0x38] sm:$0xff]  }
  0x9c   : > { %v1617_v2 = vld [vmem:[%s2066_s25 + $0xb0] sm:$0xff]   ;;  %v1621_v6 = vld [vmem:[%s2066_s25 + $0xb8] sm:$0xff]  }
  0x9d   : > { %612 = vmatpush1.bf16.msra.mxu0 %v1576_v28  ;;  %653 = vmatpush1.bf16.msra.mxu1 %v1577_v29  ;;  %v419_v11 = vld [vmem:[%s365_s17] sm:$0xf] }
  0x9e   : > { %613 = vmatprep.subr.bf16.mxu0 %v1578_v30  ;;  %654 = vmatprep.subr.bf16.mxu1 %v1580_v31  ;;  %v424_v14 = vrot.slane %v419_v11, %v423_v9  ;;  %v432_v15 = vrot.slane %v419_v11, %v431_v10  ;;  %v428_v16 = vrot.slane %v419_v11, %v427_v12 }
  0x9f   : > { %v436_v17 = vrot.slane %v419_v11, %v435_v13 }
  0xa1   : > { %614 = vmatpush1.bf16.msra.mxu0 %v1582_v32  ;;  %655 = vmatpush1.bf16.msra.mxu1 %v1583_v33 }
  0xa2   : > { %615 = vmatprep.subr.bf16.mxu0 %v1584_v34  ;;  %656 = vmatprep.subr.bf16.mxu1 %v1586_v35 }
  0xa5   : > { %616 = vmatpush1.bf16.msra.mxu0 %v1588_v36  ;;  %657 = vmatpush1.bf16.msra.mxu1 %v1589_v37 }
  0xa6   : > { %1421 = vmatprep.subr.bf16.mxu0 %v1590_v39  ;;  %1443 = vmatprep.subr.bf16.mxu1 %v1591_v40 }
  0xa8   : > { %634 = vmatmul.mubr.bf16.vlgmr.msra.gmra.mrb[0].mxu0 %v386_v38  ;;  %675 = vmatmul.mubr.bf16.vlgmr.msra.gmra.mrb[0].mxu1 %v386_v38 }
  0xa9   : > { %1422 = vmatpush3.bf16.msra.mxu0 %v1592_v41  ;;  %1444 = vmatpush3.bf16.msra.mxu1 %v1593_v42 }
  0xaa   : > { %1423 = vmatprep.subr.bf16.mxu0 %v1594_v43  ;;  %1445 = vmatprep.subr.bf16.mxu1 %v1595_v44 }
  0xad   : > { %1424 = vmatpush3.bf16.msra.mxu0 %v1596_v45  ;;  %1446 = vmatpush3.bf16.msra.mxu1 %v1597_v46 }
  0xae   : > { %1425 = vmatprep.subr.bf16.mxu0 %v1598_v47  ;;  %1447 = vmatprep.subr.bf16.mxu1 %v1599_v48 }
  0xb1   : > { %1426 = vmatpush3.bf16.msra.mxu0 %v1600_v49  ;;  %1448 = vmatpush3.bf16.msra.mxu1 %v1601_v50 }
  0xb2   : > { %1427 = vmatprep.subr.bf16.mxu0 %v1602_v51  ;;  %1449 = vmatprep.subr.bf16.mxu1 %v1603_v52 }
  0xb5   : > { %1428 = vmatpush3.bf16.msra.mxu0 %v1604_v53  ;;  %1450 = vmatpush3.bf16.msra.mxu1 %v1605_v54 }
  0xb6   : > { %1429 = vmatprep.subr.bf16.mxu0 %v1606_v55  ;;  %1451 = vmatprep.subr.bf16.mxu1 %v1607_v56 }
  0xb9   : > { %1430 = vmatpush3.bf16.msra.mxu0 %v1608_v57  ;;  %1452 = vmatpush3.bf16.msra.mxu1 %v1609_v58 }
  0xba   : > { %1431 = vmatprep.subr.bf16.mxu0 %v1610_v59  ;;  %1453 = vmatprep.subr.bf16.mxu1 %v1611_v60 }
  0xbd   : > { %1432 = vmatpush3.bf16.msra.mxu0 %v1612_v61  ;;  %1454 = vmatpush3.bf16.msra.mxu1 %v1613_v62 }
  0xbe   : > { %1433 = vmatprep.subr.bf16.mxu0 %v1614_v63  ;;  %1455 = vmatprep.subr.bf16.mxu1 %v1615_v0 }
  0xc1   : > { %1434 = vmatpush3.bf16.msra.mxu0 %v1616_v1  ;;  %1456 = vmatpush3.bf16.msra.mxu1 %v1617_v2 }
  0xc2   : > { %1435 = vmatprep.subr.bf16.mxu0 %v1618_v3  ;;  %1457 = vmatprep.subr.bf16.mxu1 %v1619_v4 }
  0xc5   : > { %1436 = vmatpush3.bf16.msra.mxu0 %v1620_v5  ;;  %1458 = vmatpush3.bf16.msra.mxu1 %v1621_v6 }
 0x17b   : > { %v635_v18 = vpop.f32.mrb[0].mxu0  ;;  %v676_v20 = vpop.f32.mrb[0].mxu1 }
 0x17c   : > { %v636_v21 = vadd.f32 %v635_v18, %v424_v14  ;;  %v677_v22 = vadd.f32 %v676_v20, %v432_v15  ;;  %v637_v23 = vpop.f32.mrb[1].mxu0  ;;  %v678_v24 = vpop.f32.mrb[1].mxu1 }
 0x17d   : > { %v638_v25 = vadd.f32 %v637_v23, %v428_v16  ;;  %v679_v26 = vadd.f32 %v678_v24, %v436_v17  ;;  %v639_v27 = vpop.f32.mrb[2].mxu0  ;;  %v680_v28 = vpop.f32.mrb[2].mxu1 }
 0x17e   : > { %vm686_vm0 = vcmp.gt.f32.partialorder %v636_v21, %v685_v19  ;;  %vm688_vm1 = vcmp.gt.f32.partialorder %v677_v22, %v685_v19  ;;  %v640_v29 = vpop.f32.mrb[3].mxu0  ;;  %v681_v30 = vpop.f32.mrb[3].mxu1 }
 0x17f   : > { %v2150_v31 = vsel %vm686_vm0, %v636_v21, 0.0  ;;  %v2152_v32 = vsel %vm688_vm1, %v677_v22, 0.0  ;;  %vm687_vm2 = vcmp.gt.f32.partialorder %v638_v25, %v685_v19  ;;  %vm689_vm3 = vcmp.gt.f32.partialorder %v679_v26, %v685_v19 }
 0x180   : > { %v696_v33 = vrot.slane %v2150_v31, 4  ;;  %v708_v34 = vrot.slane %v2152_v32, 4  ;;  %v2156_v35 = vsel %vm687_vm2, %v638_v25, 0.0  ;;  %v2158_v36 = vsel %vm689_vm3, %v679_v26, 0.0 }
 0x181   : > { %v702_v37 = vrot.slane %v2156_v35, 4  ;;  %v714_v38 = vrot.slane %v2158_v36, 4 }
 0x182   : > { %v697_v39 = vmax.f32 %v2150_v31, %v696_v33  ;;  %v709_v40 = vmax.f32 %v2152_v32, %v708_v34 }
 0x183   : > { %v703_v41 = vmax.f32 %v2156_v35, %v702_v37  ;;  %v715_v42 = vmax.f32 %v2158_v36, %v714_v38 }
 0x184   : > { %v698_v43 = vrot.slane %v697_v39, 2  ;;  %v710_v44 = vrot.slane %v709_v40, 2 }
 0x185   : > { %v704_v45 = vrot.slane %v703_v41, 2  ;;  %v716_v46 = vrot.slane %v715_v42, 2 }
 0x186   : > { %v699_v47 = vmax.f32 %v697_v39, %v698_v43  ;;  %v711_v48 = vmax.f32 %v709_v40, %v710_v44 }
 0x187   : > { %v705_v49 = vmax.f32 %v703_v41, %v704_v45  ;;  %v717_v50 = vmax.f32 %v715_v42, %v716_v46 }
 0x188   : > { %v700_v51 = vrot.slane %v699_v47, 1  ;;  %v712_v52 = vrot.slane %v711_v48, 1 }
 0x189   : > { %v706_v53 = vrot.slane %v705_v49, 1  ;;  %v718_v54 = vrot.slane %v717_v50, 1 }
 0x18a   : > { %v701_v55 = vmax.f32 %v699_v47, %v700_v51  ;;  %v713_v56 = vmax.f32 %v711_v48, %v712_v52 }
 0x18b   : > { %v707_v57 = vmax.f32 %v705_v49, %v706_v53  ;;  %v719_v58 = vmax.f32 %v717_v50, %v718_v54 }
 0x18c   : > { %vm720_vm4 = vcmp.eq.f32.partialorder %v2150_v31, %v701_v55  ;;  %vm722_vm5 = vcmp.eq.f32.partialorder %v2152_v32, %v713_v56  ;;  %v1398_v55 = vpack.c.bf16 %v2156_v35, %v2156_v35 }
 0x18d   : > { %v724_v59 = vsel %vm720_vm4, %v2139_v8, 8  ;;  %v726_v60 = vsel %vm722_vm5, %v2139_v8, 8  ;;  %vm721_vm6 = vcmp.eq.f32.partialorder %v2156_v35, %v707_v57  ;;  %vm723_vm7 = vcmp.eq.f32.partialorder %v2158_v36, %v719_v58 }
 0x18e   : > { %v728_v61 = vrot.slane %v724_v59, 4  ;;  %v746_v62 = vrot.slane %v726_v60, 4  ;;  %v725_v63 = vsel %vm721_vm6, %v2139_v8, 8  ;;  %v727_v0 = vsel %vm723_vm7, %v2139_v8, 8 }
 0x18f   : > { %v737_v1 = vrot.slane %v725_v63, 4  ;;  %v755_v2 = vrot.slane %v727_v0, 4 }
 0x190   : > { %vm729_vm8 = vcmp.lt.s32.totalorder %v724_v59, %v728_v61  ;;  %vm747_vm9 = vcmp.lt.s32.totalorder %v726_v60, %v746_v62 }
 0x191   : > { %v730_v3 = vsel %vm729_vm8, %v724_v59, %v728_v61  ;;  %v748_v4 = vsel %vm747_vm9, %v726_v60, %v746_v62  ;;  %vm738_vm10 = vcmp.lt.s32.totalorder %v725_v63, %v737_v1  ;;  %vm756_vm11 = vcmp.lt.s32.totalorder %v727_v0, %v755_v2 }
 0x192   : > { %v731_v5 = vrot.slane %v730_v3, 2  ;;  %v749_v6 = vrot.slane %v748_v4, 2  ;;  %v739_v7 = vsel %vm738_vm10, %v725_v63, %v737_v1  ;;  %v757_v9 = vsel %vm756_vm11, %v727_v0, %v755_v2 }
 0x193   : > { %v740_v10 = vrot.slane %v739_v7, 2  ;;  %v758_v11 = vrot.slane %v757_v9, 2  ;;  %v1404_v60 = vpack.c.bf16 %v2158_v36, %v2158_v36  ;;  %v1401_v61 = vpack.c.bf16 %v2150_v31, %v2150_v31 }
 0x194   : > { %vm732_vm12 = vcmp.lt.s32.totalorder %v730_v3, %v731_v5  ;;  %vm750_vm13 = vcmp.lt.s32.totalorder %v748_v4, %v749_v6  ;;  %v1407_v62 = vpack.c.bf16 %v2152_v32, %v2152_v32 }
 0x195   : > { %vm741_vm14 = vcmp.lt.s32.totalorder %v739_v7, %v740_v10  ;;  %vm759_vm15 = vcmp.lt.s32.totalorder %v757_v9, %v758_v11  ;;  %v733_v12 = vsel %vm732_vm12, %v730_v3, %v731_v5  ;;  %v751_v13 = vsel %vm750_vm13, %v748_v4, %v749_v6  ;;  %v808_v5 = vld [vmem:[#allocation10] sm:$0xff] }
 0x196   : > { %v742_v14 = vsel %vm741_vm14, %v739_v7, %v740_v10  ;;  %v760_v15 = vsel %vm759_vm15, %v757_v9, %v758_v11  ;;  %v734_v16 = vrot.slane %v733_v12, 1  ;;  %v752_v17 = vrot.slane %v751_v13, 1  ;;  %v1410_v10 = vld [vmem:[%s2277_s1] ss:$0 sm:$0xff] (!%p1409_p0) }
 0x197   : > { %v743_v18 = vrot.slane %v742_v14, 1  ;;  %v761_v19 = vrot.slane %v760_v15, 1 }
 0x198   : > { %vm735_vm0 = vcmp.lt.s32.totalorder %v733_v12, %v734_v16  ;;  %vm753_vm1 = vcmp.lt.s32.totalorder %v751_v13, %v752_v17 }
 0x199   : > { %vm744_vm2 = vcmp.lt.s32.totalorder %v742_v14, %v743_v18  ;;  %vm762_vm3 = vcmp.lt.s32.totalorder %v760_v15, %v761_v19  ;;  %v736_v20 = vsel %vm735_vm0, %v733_v12, %v734_v16  ;;  %v754_v21 = vsel %vm753_vm1, %v751_v13, %v752_v17 }
 0x19a   : > { %v745_v22 = vsel %vm744_vm2, %v742_v14, %v743_v18  ;;  %v763_v23 = vsel %vm762_vm3, %v760_v15, %v761_v19  ;;  %vm764_vm4 = vcmp.eq.s32.totalorder %v2139_v8, %v736_v20  ;;  %vm766_vm5 = vcmp.eq.s32.totalorder %v2139_v8, %v754_v21 }
 0x19b   : > { %vm765_vm6 = vcmp.eq.s32.totalorder %v2139_v8, %v745_v22  ;;  %vm767_vm7 = vcmp.eq.s32.totalorder %v2139_v8, %v763_v23  ;;  %v768_v24 = vsel %vm764_vm4, -inf, %v2150_v31  ;;  %v770_v25 = vsel %vm766_vm5, -inf, %v2152_v32 }
 0x19c   : > { %v769_v26 = vsel %vm765_vm6, -inf, %v2156_v35  ;;  %v771_v27 = vsel %vm767_vm7, -inf, %v2158_v36  ;;  %v772_v28 = vrot.slane %v768_v24, 4  ;;  %v784_v29 = vrot.slane %v770_v25, 4 }
 0x19d   : > { %v778_v30 = vrot.slane %v769_v26, 4  ;;  %v790_v33 = vrot.slane %v771_v27, 4 }
 0x19e   : > { %v773_v34 = vmax.f32 %v768_v24, %v772_v28  ;;  %v785_v37 = vmax.f32 %v770_v25, %v784_v29 }
 0x19f   : > { %v779_v38 = vmax.f32 %v769_v26, %v778_v30  ;;  %v791_v39 = vmax.f32 %v771_v27, %v790_v33 }
 0x1a0   : > { %v774_v40 = vrot.slane %v773_v34, 2  ;;  %v786_v41 = vrot.slane %v785_v37, 2 }
 0x1a1   : > { %v780_v42 = vrot.slane %v779_v38, 2  ;;  %v792_v8 = vrot.slane %v791_v39, 2 }
 0x1a2   : > { %v775_v43 = vmax.f32 %v773_v34, %v774_v40  ;;  %v787_v44 = vmax.f32 %v785_v37, %v786_v41 }
 0x1a3   : > { %v781_v45 = vmax.f32 %v779_v38, %v780_v42  ;;  %v793_v46 = vmax.f32 %v791_v39, %v792_v8 }
 0x1a4   : > { %v776_v47 = vrot.slane %v775_v43, 1  ;;  %v788_v48 = vrot.slane %v787_v44, 1 }
 0x1a5   : > { %v782_v49 = vrot.slane %v781_v45, 1  ;;  %v794_v50 = vrot.slane %v793_v46, 1 }
 0x1a6   : > { %v777_v51 = vmax.f32 %v775_v43, %v776_v47  ;;  %v789_v52 = vmax.f32 %v787_v44, %v788_v48 }
 0x1a7   : > { %v783_v53 = vmax.f32 %v781_v45, %v782_v49  ;;  %v795_v54 = vmax.f32 %v793_v46, %v794_v50 }
 0x1a8   : > { %vm796_vm8 = vcmp.ge.f32.partialorder %v2150_v31, %v777_v51  ;;  %vm798_vm9 = vcmp.ge.f32.partialorder %v2152_v32, %v789_v52 }
 0x1a9   : > { %vm797_vm10 = vcmp.ge.f32.partialorder %v2156_v35, %v783_v53  ;;  %vm799_vm11 = vcmp.ge.f32.partialorder %v2158_v36, %v795_v54  ;;  %v800_v56 = vsel %vm796_vm8, %v2150_v31, 0.0  ;;  %vm1400_vm12 = vmpackc.low %vm796_vm8, %vm796_vm8  ;;  %v802_v57 = vsel %vm798_vm9, %v2152_v32, 0.0 }
 0x1aa   : > { %v801_v58 = vsel %vm797_vm10, %v2156_v35, 0.0  ;;  %vm1397_vm13 = vmpackc.low %vm797_vm10, %vm797_vm10  ;;  %v803_v59 = vsel %vm799_vm11, %v2158_v36, 0.0  ;;  %804 = vst [vmem:[%s2068_s30] sm:$0xff] %v800_v56 }
 0x1ab   : > { %806 = vst [vmem:[%s2068_s30 + $0x10] sm:$0xff] %v802_v57  ;;  %805 = vst [vmem:[%s2068_s30 + $0x8] sm:$0xff] %v801_v58  ;;  %1399 = vmatprep.mubr.msk.bf16.mxu0 %vm1397_vm13, %v1398_v55 }
 0x1ac   : > { %807 = vst [vmem:[%s2068_s30 + $0x18] sm:$0xff] %v803_v59  ;;  %vm1403_vm14 = vmpackc.low %vm799_vm11, %vm799_vm11  ;;  %1402 = vmatmul.mubr.msk.bf16.vlgmr.msra.gmra.mrb[4].mxu0 %vm1400_vm12, %v1401_v61 }
 0x1ad   : > { %1405 = vmatprep.mubr.msk.bf16.mxu1 %vm1403_vm14, %v1404_v60  ;;  %vm1406_vm15 = vmpackc.low %vm798_vm9, %vm798_vm9 }
 0x1ae   : > { %1408 = vmatmul.mubr.msk.bf16.vlgmr.msra.gmra.mrb[4].mxu1 %vm1406_vm15, %v1407_v62 }
 0x27f   : > { %v1437_v35 = vpop.f32.mrb[4].mxu0 }
 0x280   : > { %v1438_v63 = vpop.f32.mrb[5].mxu0 }
 0x281   : > { %v1459_v36 = vpop.f32.mrb[4].mxu1  ;;  %v1439_v0 = vadd.f32 %v1438_v63, %v1437_v35  ;;  %v1440_v1 = vpop.f32.mrb[6].mxu0 }
 0x282   : > { %v1460_v31 = vpop.f32.mrb[5].mxu1  ;;  %v1441_v4 = vpop.f32.mrb[7].mxu0 }
 0x283   : > { %v1461_v2 = vadd.f32 %v1460_v31, %v1459_v36  ;;  %v1462_v3 = vpop.f32.mrb[6].mxu1  ;;  %1154 = sbr.rel (%p1409_p0) target bundleno = 660 (0x294), region = 64 }
 0x284   : > { %v1463_v6 = vpop.f32.mrb[7].mxu1 }
 0x285   : > { %v1144_v7 = vadd.f32 %v1461_v2, %v1439_v0 }
 0x287   : > { %v1149_v9 = vadd.f32 %v1144_v7, %v808_v5 }
 0x289   : > { %1150 = vst [vmem:[#allocation10] sm:$0xff] %v1149_v9 }
 0x290   : > { %v1155_v32 = vld [vmem:[#allocation10] sm:$0xff] }
 0x291   : > { %v1163_v11 = vadd.f32 %v1410_v10, %v1155_v32 }
 0x293   : > { %1164 = vst [vmem:[#allocation10] sm:$0xff] %v1163_v11 }
 0x294 PF: > { %s1823_s19 = smov [#allocation10]   ;;  %s1420_s24 = sshll.u32 %s1951_s21, 9 }
 0x295   : > { %s1177_s20 = sshll.u32 %s1823_s19, 4  ;;  %s2215_s17 = scalar_lea.hbm %s2283_s7, %s1420_s24  ;;  %s1178_s20 = int_to_ptr.vmem [resolvable:$true] %s1177_s20 }
 0x296   : > { %s1710_s25 = scalar_lea.vmem %s1178_s20, 128  ;;  %p2311_p8 = scmp.eq.s32.totalorder %s1951_s21, 1 }
 0x297   : > { %p1711_p11 = scmp.ne.s32.totalorder %s1178_s20, %s1710_s25  ;;  %p1717_p3 = scmp.lt.s32.totalorder %s1178_s20, %s1178_s20 }
 0x298   : > { %p1718_p6 = scmp.lt.s32.totalorder %s1710_s25, %s1710_s25 }
 0x299   : > { %p1712_p1 = pnand %p1711_p11, %p2311_p8 }
 0x29a   : > { %p1719_p5 = por %p1718_p6, %p1717_p3 }
 0x29b   : > { %p1713_p10 = pneg %p1712_p1 }
 0x29d   : > { %p1720_p2 = pnand %p1719_p5, %p1713_p10 }
 0x29f   : > { %1723 = shalt.err (!%p1720_p2)
}
 0x2a0   : > { %s1724_s8 = scalar_lea.hbm %s2282_s6, 128  ;;  %p2312_p9 = pmov %p2311_p8 }
 0x2a1   : > { %p1725_p7 = scmp.ne.s32.totalorder %s2282_s6, %s1724_s8  ;;  %p1730_p4 = scmp.lt.u32.totalorder %s1724_s8, %s2282_s6 }
 0x2a3   : > { %p1726_p12 = pnand %p1725_p7, %p2312_p9 }
 0x2a5   : > { %p1727_p13 = pneg %p1726_p12 }
 0x2a7   : > { %p1732_p0 = pnand %p1730_p4, %p1727_p13 }
 0x2a9   : > { %1735 = shalt.err (!%p1732_p0)
}
 0x2aa   : > { %p2313_p11 = pmov %p2311_p8  ;;  %s1191_s19 = sshll.u32 %s2068_s30, 4  ;;  %s1192_s19 = int_to_ptr.vmem [resolvable:$true] %s1191_s19 }
 0x2ab   : > { %s1166_s24 = scalar_lea.sflag [#allocation12], %s2049_s11  ;;  %s1736_s13 = scalar_lea.vmem %s1192_s19, 512 }
 0x2ac   : > { %1474 = dma.vmem_to_hbm [thread:$0]  (%p2313_p11), %s1178_s20, 128, %s2282_s6, [#allocation6]  }
 0x2ad   : > { %p1737_p8 = scmp.ne.s32.totalorder %s1192_s19, %s1736_s13  ;;  %p2314_p1 = scmp.ne.s32.totalorder %s2299_s16, 0 }
 0x2ae   : > { %s1824_s15 = smov [#allocation11]  }
 0x2af   : > { %p1738_p10 = pnand %p1737_p8, %p2314_p1  ;;  %s1740_s25 = sshll.u32 %s1824_s15, 4  ;;  %s1741_s25 = int_to_ptr.vmem [resolvable:$false] %s1740_s25 }
 0x2b0   : > { %s1742_s23 = scalar_lea.vmem %s1741_s25, 1024  ;;  %p1743_p6 = scmp.lt.s32.totalorder %s1192_s19, %s1741_s25 }
 0x2b1   : > { %p1739_p3 = pneg %p1738_p10  ;;  %p1744_p5 = scmp.lt.s32.totalorder %s1742_s23, %s1736_s13 }
 0x2b3   : > { %p1745_p2 = por %p1744_p5, %p1743_p6 }
 0x2b5   : > { %p1746_p7 = pnand %p1745_p2, %p1739_p3 }
 0x2b7   : > { %1749 = shalt.err (!%p1746_p7)
}
 0x2b8   : > { %s1750_s11 = scalar_lea.hbm %s2215_s17, 512  ;;  %s1754_s12 = scalar_lea.hbm %s2283_s7, 1024 }
 0x2b9   : > { %p1751_p9 = scmp.ne.s32.totalorder %s2215_s17, %s1750_s11  ;;  %p1755_p4 = scmp.lt.u32.totalorder %s2215_s17, %s2283_s7 }
 0x2ba   : > { %p1756_p0 = scmp.lt.u32.totalorder %s1754_s12, %s1750_s11  ;;  %p1758_p8 = scmp.lt.u32.totalorder %s1750_s11, %s2215_s17 }
 0x2bb   : > { %p1752_p12 = pnand %p1751_p9, %p2314_p1 }
 0x2bc   : > { %p1757_p11 = por %p1756_p0, %p1755_p4 }
 0x2bd   : > { %p1753_p13 = pneg %p1752_p12 }
 0x2be   : > { %p1759_p10 = por %p1758_p8, %p1757_p11 }
 0x2c0   : > { %p1760_p3 = pnand %p1759_p10, %p1753_p13 }
 0x2c2   : > { %1763 = shalt.err (!%p1760_p3)
}
 0x2c3   : > { %1475 = dma.vmem_to_hbm [thread:$0]  (%p2314_p1), %s1192_s19, 512, %s2215_s17, %s1166_s24  }
 0x2c4   : > { %p2315_p6 = scmp.eq.s32.totalorder %s1951_s21, 1 }
 0x2c6   : > { %1789 = dma.done.wait (%p2315_p6), [#allocation6], 128   ;;  %p2316_p5 = pmov %p2315_p6 }
 0x2c8   : > { %1791 = vsyncadd (%p2316_p5), [#allocation6], 4294967168 }
 0x2c9 PF: > { %s1207_s28 = sand.u32 1, %s1798_s26   ;;  %p2317_p2 = scmp.ne.s32.totalorder %s2300_s18, 0 }
 0x2ca   : > { %p2318_p7 = scmp.ge.s32.totalorder %s1810_s29, 2  ;;  %s1208_s9 = scalar_lea.sflag [#allocation12], %s1207_s28 }
 0x2cc   : > { %p1491_p9 = pnand %p2318_p7, %p2317_p2 }
 0x2ce   : > { %1793 = dma.done.wait (!%p1491_p9), %s1208_s9, 512  }
 0x2cf   : > { %1795 = vsyncadd (!%p1491_p9), %s1208_s9, 4294966784  ;;  %s2319_s16 = sld [smem:[#allocation17_spill]]  ;;  %s2320_s28 = sld [smem:[#allocation18_spill]] }
 0x2d0   : > { %p24_p1 = scmp.ge.s32.totalorder %s1889_s5, 4   ;;  %s2321_s26 = smov %s1802_s27 }
 0x2d1   : > { %s2323_s29 = smov %s1889_s5 }
 0x2d2   :  { %26 = sbr.rel (!%p24_p1) target bundleno = 10 (0xa), region = 125 }
 0x2d5   : > { %s2322_s27 = smov %s2319_s16 }
 0x2d9   :  { %1213 = vsyncpa [#allocation5], 1 }
 0x2da   :  { %1215 = vsyncpa [#allocation5 + $0x1], 1 }
 0x2db   :  { %1216 = vsyncpa [#allocation8], 1 }
 0x2dc   :  { %1218 = vsyncpa [#allocation8 + $0x1], 1 }
 0x2dd   :  { %1219 = vsyncpa [#allocation6], 1 }
 0x2de   :  { %1221 = vsyncpa [#allocation6 + $0x1], 1 }
 0x2df   :  { %1222 = vsyncpa [#allocation12], 1 }
 0x2e0   :  { %1224 = vsyncpa [#allocation12 + $0x1], 1 }

</bundles_post_ra>
